<compile_context>
chip_gen: v6e
topology: v6e:2x2x1
jax: 0.10.0
libtpu: 0.0.40
codegen_flags: <defaults>
</compile_context>

<pallas_src>
import jax
import jax.numpy as jnp
from jax.experimental import pallas as pl
from jax.experimental.pallas import tpu as pltpu


def _round_up(x: int, m: int) -> int:
    return ((x + m - 1) // m) * m


def _sublane(dtype) -> int:
    """Minimum sublane multiple for a dtype (f32->8, bf16->16, int8->32)."""
    return max(8, 32 // jnp.dtype(dtype).itemsize)


def _pick_tile(padded_dim: int, align: int, cap: int) -> int:
    """Largest multiple of `align` that divides `padded_dim` and is <= cap."""
    cap = max(align, min(cap, padded_dim))
    best = align
    for t in range(align, cap + 1, align):
        if padded_dim % t == 0:
            best = t
    return best


def _linear_kernel_acc_out(x_ref, w_ref, b_ref, o_ref):
    """f32 output: accumulate directly into the resident output tile."""
    k = pl.program_id(2)

    @pl.when(k == 0)
    def _init():
        # Bias is the accumulator's initial value -> added exactly once.
        o_ref[...] = jnp.broadcast_to(b_ref[...], o_ref.shape)

    o_ref[...] += jnp.dot(x_ref[...], w_ref[...],
                          preferred_element_type=jnp.float32)


def _linear_kernel_scratch(x_ref, w_ref, b_ref, o_ref, acc_ref):
    """Low-precision output: f32 VMEM accumulator, cast + bias at last K step."""
    k = pl.program_id(2)

    @pl.when(k == 0)
    def _init():
        acc_ref[...] = jnp.zeros_like(acc_ref)

    acc_ref[...] += jnp.dot(x_ref[...], w_ref[...],
                            preferred_element_type=jnp.float32)

    @pl.when(k == pl.num_programs(2) - 1)
    def _finalize():
        o_ref[...] = (acc_ref[...] + b_ref[...]).astype(o_ref.dtype)


class SLNetPallas:
    """Pallas-TPU forward for PyTorch SLNet (a single nn.Linear).

    The weight is transposed to (In, Out) and zero-padded to minimum lane
    alignment exactly once at construction, so the per-call hot path only
    pads the activations.
    """

    def __init__(self, weight, bias, *, compute_dtype=None, out_dtype=None,
                 tm_cap=512, tn_cap=512, tk_cap=512):
        Out, In = weight.shape
        assert bias.shape == (Out,)
        self.In, self.Out = In, Out
        self.compute_dtype = jnp.dtype(compute_dtype or weight.dtype)
        self.out_dtype = jnp.dtype(out_dtype or weight.dtype)
        self.tm_cap, self.tn_cap, self.tk_cap = tm_cap, tn_cap, tk_cap

        # Minimum-alignment padding only (not tile-granular).
        self.In_p = _round_up(In, 128)
        self.Out_p = _round_up(Out, 128)

        # One-time HBM transpose to (In, Out): the kernel then contracts
        # (tm, tk) @ (tk, tn) with no per-tile transpose.
        w_t = weight.astype(self.compute_dtype).T
        self.w_p = jnp.pad(w_t, ((0, self.In_p - In), (0, self.Out_p - Out)))
        # Bias stays f32: it is added to the f32 accumulator.
        self.b_p = jnp.pad(bias.astype(jnp.float32),
                           (0, self.Out_p - Out)).reshape(1, self.Out_p)

    def __call__(self, x, *, force_pallas=False):
        lead = x.shape[:-1]
        assert x.shape[-1] == self.In
        x = x.reshape(-1, self.In).astype(self.compute_dtype)
        B = x.shape[0]

        # Sublane multiple from the narrowest dtype tiled along sublanes.
        sm = max(_sublane(self.compute_dtype), _sublane(self.out_dtype))
        B_p = _round_up(B, sm)

        tm = _pick_tile(B_p, sm, self.tm_cap)
        tn = _pick_tile(self.Out_p, 128, self.tn_cap)
        tk = _pick_tile(self.In_p, 128, self.tk_cap)

        # v7x megacore: keep >= 2 tiles on one "parallel" axis when possible.
        if B_p // tm == 1 and self.Out_p // tn == 1:
            if self.Out_p >= 2 * 128:
                tn = _pick_tile(self.Out_p, 128, self.Out_p // 2)
            elif B_p >= 2 * sm:
                tm = _pick_tile(B_p, sm, B_p // 2)

        grid = (B_p // tm, self.Out_p // tn, self.In_p // tk)

        if grid == (1, 1, 1) and not force_pallas:
            # Tiny problem: pallas_call fixed overhead dominates -> fused XLA dot.
            y = jnp.dot(x, self.w_p[:self.In, :self.Out],
                        preferred_element_type=jnp.float32)
            y = (y + self.b_p[0, :self.Out]).astype(self.out_dtype)
            return y.reshape(*lead, self.Out)

        # Only the (cheap) activation pad sits on the per-call hot path.
        x_p = jnp.pad(x, ((0, B_p - B), (0, self.In_p - self.In)))

        in_bytes = self.compute_dtype.itemsize
        out_bytes = self.out_dtype.itemsize
        use_scratch = self.out_dtype != jnp.float32
        kernel = _linear_kernel_scratch if use_scratch else _linear_kernel_acc_out
        scratch = [pltpu.VMEM((tm, tn), jnp.float32)] if use_scratch else []

        # Double-buffered VMEM footprint: inputs + output + bias (+ f32 acc).
        footprint = (2 * (tm * tk + tk * tn) * in_bytes
                     + 2 * tm * tn * out_bytes
                     + 2 * tn * 4
                     + (tm * tn * 4 if use_scratch else 0))
        vmem_limit = min(max(footprint + (4 << 20), 16 << 20), 48 << 20)

        # Real streamed traffic: x re-read once per N tile, W once per M tile.
        cost = pl.CostEstimate(
            flops=2 * B_p * self.In_p * self.Out_p,
            transcendentals=0,
            bytes_accessed=(in_bytes * (B_p * self.In_p * grid[1]
                                        + self.In_p * self.Out_p * grid[0])
                            + out_bytes * B_p * self.Out_p
                            + 4 * self.Out_p * grid[0]),
        )

        out = pl.pallas_call(
            kernel,
            out_shape=jax.ShapeDtypeStruct((B_p, self.Out_p), self.out_dtype),
            grid_spec=pltpu.PrefetchScalarGridSpec(
                num_scalar_prefetch=0,
                grid=grid,
                in_specs=[
                    pl.BlockSpec((tm, tk), lambda i, j, k: (i, k)),  # x tile
                    pl.BlockSpec((tk, tn), lambda i, j, k: (k, j)),  # W^T tile
                    pl.BlockSpec((1, tn), lambda i, j, k: (0, j)),   # bias tile
                ],
                out_specs=pl.BlockSpec((tm, tn), lambda i, j, k: (i, j)),
                scratch_shapes=scratch,
            ),
            compiler_params=pltpu.CompilerParams(
                dimension_semantics=("parallel", "parallel", "arbitrary"),
                vmem_limit_bytes=vmem_limit),
            cost_estimate=cost,
        )(x_p, self.w_p, self.b_p)

        return out[:B, :self.Out].reshape(*lead, self.Out)


if __name__ == "__main__":
    def make_linear(key, B, In, Out, dtype=jnp.float32):
        kx, kw, kb = jax.random.split(key, 3)
        x = jax.random.normal(kx, (B, In), dtype=jnp.float32).astype(dtype)
        bound = 1.0 / (In ** 0.5)  # PyTorch-style uniform init bound
        w = jax.random.uniform(kw, (Out, In), minval=-bound, maxval=bound,
                               dtype=jnp.float32).astype(dtype)
        b = jax.random.uniform(kb, (Out,), minval=-bound, maxval=bound,
                               dtype=jnp.float32).astype(dtype)
        return x, w, b

    key = jax.random.PRNGKey(0)
    k0, k1, k2 = jax.random.split(key, 3)

    # 1) Tiny shapes (nn.Linear(32, 16)) -> grid (1,1,1) -> fused XLA fallback.
    x0, w0, b0 = make_linear(k0, 8, 32, 16)
    y0 = SLNetPallas(w0, b0)(x0)
    jax.block_until_ready(y0)
    assert y0.shape == (8, 16)
    assert jnp.allclose(y0, x0 @ w0.T + b0, atol=1e-4, rtol=1e-4)

    # 2) Main Pallas path, f32 direct-output accumulation.
    #    In=1280 exercises the divisor-based K tiling (tk=256, 5 K steps) and
    #    the megacore N split (tn 384 -> 128): grid = (1, 3, 5).
    x1, w1, b1 = make_linear(k1, 256, 1280, 384)
    net1 = SLNetPallas(w1, b1)
    y1 = net1(x1)
    jax.block_until_ready(y1)
    assert y1.shape == (256, 384)
    assert jnp.allclose(y1, x1 @ w1.T + b1, atol=2e-2, rtol=2e-2)

    # 3) bf16 compute + bf16 output -> f32 VMEM accumulator kernel variant,
    #    sublane multiple 16.  grid = (1, 2, 1).
    x2, w2, b2 = make_linear(k2, 128, 256, 256)
    net2 = SLNetPallas(w2, b2, compute_dtype=jnp.bfloat16,
                       out_dtype=jnp.bfloat16)
    y2 = net2(x2)
    jax.block_until_ready(y2)
    assert y2.shape == (128, 256)
    ref2 = x2 @ w2.T + b2
    assert jnp.allclose(y2.astype(jnp.float32), ref2, atol=1e-1, rtol=1e-1)

    print("KERNEL_OK")
</pallas_src>

<mosaic_0001>
module attributes {stable_mosaic.version = 11 : i64} {
  func.func @_linear_kernel_acc_out(%arg0: i32, %arg1: i32, %arg2: i32, %arg3: memref<256x256xf32, #tpu.memory_space<vmem>>, %arg4: memref<256x128xf32, #tpu.memory_space<vmem>>, %arg5: memref<1x128xf32, #tpu.memory_space<vmem>>, %arg6: memref<256x128xf32, #tpu.memory_space<vmem>>) attributes {dimension_semantics = [#tpu.dimension_semantics<parallel>, #tpu.dimension_semantics<parallel>, #tpu.dimension_semantics<arbitrary>], iteration_bounds = array<i64: 1, 3, 5>, scalar_prefetch = 0 : i64, scratch_operands = 0 : i64, tpu.core_type = #tpu.core_type<tc>, window_params = [{transform_indices = @transform_0, window_bounds = array<i64: 256, 256>}, {transform_indices = @transform_1, window_bounds = array<i64: 256, 128>}, {transform_indices = @transform_2, window_bounds = array<i64: 1, 128>}, {transform_indices = @transform_3, window_bounds = array<i64: 256, 128>}]} {
    %c0_i32 = arith.constant 0 : i32
    %0 = arith.cmpi eq, %arg2, %c0_i32 : i32
    %1 = arith.extui %0 : i1 to i32
    %c0_i32_0 = arith.constant 0 : i32
    %2 = arith.cmpi ne, %1, %c0_i32_0 : i32
    scf.if %2 {
      %c0_8 = arith.constant 0 : index
      %c0_9 = arith.constant 0 : index
      %9 = vector.load %arg5[%c0_8, %c0_9] : memref<1x128xf32, #tpu.memory_space<vmem>>, vector<1x128xf32>
      %10 = vector.shape_cast %9 : vector<1x128xf32> to vector<1x128xf32>
      %11 = vector.broadcast %10 : vector<1x128xf32> to vector<256x128xf32>
      %c0_10 = arith.constant 0 : index
      %c0_11 = arith.constant 0 : index
      %12 = vector.load %arg6[%c0_10, %c0_11] : memref<256x128xf32, #tpu.memory_space<vmem>>, vector<256x128xf32>
      tpu.vector_store %arg6[%c0_10, %c0_11], %11 {strides = array<i32>} : memref<256x128xf32, #tpu.memory_space<vmem>>, vector<256x128xf32>,
    } else {
    }
    %c0 = arith.constant 0 : index
    %c0_1 = arith.constant 0 : index
    %3 = vector.load %arg6[%c0, %c0_1] : memref<256x128xf32, #tpu.memory_space<vmem>>, vector<256x128xf32>
    %c0_2 = arith.constant 0 : index
    %c0_3 = arith.constant 0 : index
    %4 = vector.load %arg3[%c0_2, %c0_3] : memref<256x256xf32, #tpu.memory_space<vmem>>, vector<256x256xf32>
    %c0_4 = arith.constant 0 : index
    %c0_5 = arith.constant 0 : index
    %5 = vector.load %arg4[%c0_4, %c0_5] : memref<256x128xf32, #tpu.memory_space<vmem>>, vector<256x128xf32>
    %cst = arith.constant dense<0.000000e+00> : vector<256x128xf32>
    %6 = tpu.matmul %4, %5, %cst {dimension_numbers = #tpu.dot_dimension_numbers<[1], [0], [0], [1], [0, 0, 1, 1], [], []>} : vector<256x256xf32>, vector<256x128xf32>, vector<256x128xf32> -> vector<256x128xf32>
    %7 = arith.addf %3, %6 : vector<256x128xf32>
    %c0_6 = arith.constant 0 : index
    %c0_7 = arith.constant 0 : index
    %8 = vector.load %arg6[%c0_6, %c0_7] : memref<256x128xf32, #tpu.memory_space<vmem>>, vector<256x128xf32>
    tpu.vector_store %arg6[%c0_6, %c0_7], %7 {strides = array<i32>} : memref<256x128xf32, #tpu.memory_space<vmem>>, vector<256x128xf32>,
    return
  }
  func.func @transform_0(%arg0: i32, %arg1: i32, %arg2: i32) -> (i32, i32) {
    %c0_i32 = arith.constant 0 : i32
    return %arg0, %arg2 : i32, i32
  }
  func.func @transform_1(%arg0: i32, %arg1: i32, %arg2: i32) -> (i32, i32) {
    %c0_i32 = arith.constant 0 : i32
    return %arg2, %arg1 : i32, i32
  }
  func.func @transform_2(%arg0: i32, %arg1: i32, %arg2: i32) -> (i32, i32) {
    %c0_i32 = arith.constant 0 : i32
    %c0_i32_0 = arith.constant 0 : i32
    return %c0_i32, %arg1 : i32, i32
  }
  func.func @transform_3(%arg0: i32, %arg1: i32, %arg2: i32) -> (i32, i32) {
    %c0_i32 = arith.constant 0 : i32
    return %arg0, %arg1 : i32, i32
  }
}

</mosaic_0001>

<bundles_post_ra>
// kernel: tpu_custom_call.1
= control target key start
LH: loop header
LB: loop body
LE: loop exit
PB: predicated region body
PF: predicated region fallthrough
CT: control target
= control target key end

     0   :  { %s2023_s0 = inlined_call_operand.hbm [shape: f32[256,1280], index: 0, kind: input, shape index: {}]   ;;  %s2024_s1 = inlined_call_operand.hbm [shape: f32[1280,384], index: 1, kind: input, shape index: {}]   ;;  %s2025_s2 = inlined_call_operand.hbm [shape: f32[1,384], index: 2, kind: input, shape index: {}]   ;;  %s2026_s3 = inlined_call_operand.hbm [shape: f32[256,384], index: 3, kind: output, shape index: {}]  }
   0x1   :  { %2035 = sst [smem:[#allocation20_spill]] %s2023_s0 }
   0x2   :  { %2036 = sst [smem:[#allocation21_spill]] %s2024_s1 }
   0x3   :  { %2037 = sst [smem:[#allocation22_spill]] %s2026_s3 }
   0x4   :  { %8 = vsyncpa [#allocation3], 0 }
   0x5   :  { %10 = vsyncpa [#allocation3 + $0x1], 0 }
   0x6   :  { %11 = vsyncpa [#allocation6], 0 }
   0x7   :  { %13 = vsyncpa [#allocation6 + $0x1], 0 }
   0x8   :  { %14 = vsyncpa [#allocation4], 0 }
   0x9   :  { %16 = vsyncpa [#allocation4 + $0x1], 0  ;;  %s1410_s12 = smov 0   ;;  %s1412_s13 = smov 0  }
   0xa   :  { %s1414_s14 = smov 0   ;;  %s1416_s15 = smov 0  }
   0xb   :  { %s1418_s16 = smov 0   ;;  %s1420_s17 = smov 0  }
   0xc   :  { %s1422_s18 = smov 0   ;;  %s1424_s19 = smov 0  }
   0xd   :  { %s1426_s20 = smov 0   ;;  %s1428_s21 = smov 0  }
   0xe   :  { %s1430_s22 = smov 0   ;;  %s1432_s23 = smov 0  }
   0xf   :  { %s1434_s24 = smov 0   ;;  %s1436_s25 = smov 0  }
  0x10 LB: > { %2038 = sst [smem:[#allocation13_spill]] %s1358_s21  ;;  %s34_s26 = sadd.s32 1, %s1366_s23  ;;  %s1374_s25 = sphi %s1436_s25, %s22_s25   ;;  %s1370_s24 = sphi %s1434_s24, %s2073_s24   ;;  %s1366_s23 = sphi %s1432_s23, %s2072_s23   ;;  %s1362_s22 = sphi %s1430_s22, %s2071_s22   ;;  %s1358_s21 = sphi %s1428_s21, %s2070_s21   ;;  %s1354_s20 = sphi %s1426_s20, %s2082_s20   ;;  %s1350_s19 = sphi %s1424_s19, %s2081_s19   ;;  %s1346_s18 = sphi %s1422_s18, %s2080_s18   ;;  %s1342_s17 = sphi %s1420_s17, %s2079_s17   ;;  %s1338_s16 = sphi %s1418_s16, %s2078_s16   ;;  %s1334_s15 = sphi %s1416_s15, %s2077_s15   ;;  %s1330_s14 = sphi %s1414_s14, %s2076_s14   ;;  %s1326_s13 = sphi %s1412_s13, %s2075_s13   ;;  %s1322_s12 = sphi %s1410_s12, %s2074_s12  }
  0x11   : > { %2039 = sst [smem:[#allocation14_spill]] %s1362_s22  ;;  %p1482_p0 = scmp.ge.s32.totalorder %s34_s26, 5 }
  0x12   : > { %2040 = sst [smem:[#allocation15_spill]] %s1366_s23  ;;  %p58_p1 = scmp.eq.s32.totalorder %s1374_s25, 0 }
  0x13   : > { %2041 = sst [smem:[#allocation16_spill]] %s1370_s24  ;;  %p85_p2 = scmp.ne.s32.totalorder %s1342_s17, %s1338_s16 }
  0x14   : > { %s2084_s26 = smov (%p1482_p0, %s34_s26), 0  ;;  %p91_p4 = scmp.ne.s32.totalorder %s1338_s16, %s1334_s15 }
  0x15   : > { %2043 = sst [smem:[#allocation17_spill]] %s2084_s26  ;;  %p87_p3 = por %p85_p2, %p58_p1 }
  0x16   : > { %s1500_s30 = ssub.s32 %s1366_s23, %s2084_s26  ;;  %p2030_p6 = scmp.lt.s32.totalorder %s1374_s25, 15 }
  0x17   : > { %p48_p5 = scmp.eq.s32.totalorder %s1500_s30, 0  ;;  %s193_s4 = sand.u32 1, %s1374_s25  }
  0x18   : > { %s195_s5 = sand.u32 1, %s1342_s17   ;;  %s991_s7 = smul.u32 96, %s1366_s23 }
  0x19   : > { %s911_s6 = sshll.u32 %s195_s5, 8  ;;  %p1509_p7 = pnand %p2030_p6, %p87_p3 }
  0x1a   : > { %s197_s8 = scalar_lea.vmem [#allocation5], %s911_s6  ;;  %s203_s11 = sadd.s32 %s1370_s24, %s991_s7 }
  0x1b   : > { %s206_s9 = sshll.u32 %s197_s8, 4  ;;  %s914_s29 = sshll.u32 %s203_s11, 7  ;;  %s207_s9 = int_to_ptr.vmem [resolvable:$true] %s206_s9 }
  0x1c   : > { %s2045_s1 = sld [smem:[#allocation21_spill]]  ;;  %s1517_s22 = scalar_lea.sflag [#allocation6], %s193_s4 }
  0x1d   : > { %p1140_p8 = pneg %p1509_p7  ;;  %s1151_s5 = scalar_lea.vmem %s207_s9, 4096 }
  0x1e   : > { %p1152_p9 = scmp.ne.s32.totalorder %s207_s9, %s1151_s5  ;;  %s1376_s6 = smov [#allocation5]  }
  0x1f   : > { %s1156_s8 = sshll.u32 %s1376_s6, 4  ;;  %s1157_s8 = int_to_ptr.vmem [resolvable:$false] %s1156_s8 }
  0x20   : > { %p1154_p10 = pnand %p1152_p9, %p1140_p8  ;;  %s1158_s21 = scalar_lea.vmem %s1157_s8, 8192 }
  0x21   : > { %p1159_p12 = scmp.lt.s32.totalorder %s207_s9, %s1157_s8  ;;  %p1160_p13 = scmp.lt.s32.totalorder %s1158_s21, %s1151_s5 }
  0x22   : > { %s205_s3 = scalar_lea.hbm %s2045_s1, %s914_s29  ;;  %p1155_p11 = pneg %p1154_p10 }
  0x23   : > { %p1161_p2 = por %p1160_p13, %p1159_p12 }
  0x25   : > { %p1162_p3 = pnand %p1161_p2, %p1155_p11 }
  0x27   : > { %1165 = shalt.err (!%p1162_p3)
}
  0x28   : > { %s1377_s7 = smov 384   ;;  %s1378_s21 = smov 128  }
  0x29   : > { %s1379_s26 = smov 8   ;;  %p916_p8 = scmp.ge.s32.totalorder %s1374_s25, 1 }
  0x2a   : > { %1006 = dma.hbm_to_vmem [thread:$0]  (!%p1509_p7), %s205_s3, 4096, %s207_s9, %s1517_s22, %s1377_s7, %s1378_s21, %s1379_s26  }
  0x2b   : > { %p231_p9 = scmp.lt.s32.totalorder %s1374_s25, 16  ;;  %s50_s29 = sadd.s32 1, %s1354_s20 }
  0x2c   : > { %s1534_s4 = scalar_select %p48_p5, %s1354_s20, %s50_s29  }
  0x2d   : > { %p1526_p10 = pnand %p916_p8, %p231_p9  ;;  %p57_p11 = scmp.ne.s32.totalorder %s1354_s20, %s1350_s19 }
  0x2e   : > { %2047 = sst [smem:[#allocation18_spill]] %s1534_s4  ;;  %p63_p12 = scmp.ne.s32.totalorder %s1350_s19, %s1346_s18 }
  0x2f   : > { %s169_s11 = sand.u32 1, %s1354_s20   ;;  %s926_s5 = sshll.u32 %s1366_s23, 8 }
  0x30   : > { %p59_p13 = por %p58_p1, %p57_p11  ;;  %s908_s6 = sshll.u32 %s169_s11, 9 }
  0x31   : > { %s2048_s0 = sld [smem:[#allocation20_spill]]  ;;  %s173_s7 = scalar_lea.vmem [#allocation2], %s908_s6 }
  0x32   : > { %p1549_p7 = pnand %p2030_p6, %p59_p13  ;;  %s183_s21 = sshll.u32 %s173_s7, 4  ;;  %s184_s21 = int_to_ptr.vmem [resolvable:$true] %s183_s21 }
  0x33   : > { %s170_s26 = scalar_lea.sflag [#allocation3], %s169_s11  ;;  %s1179_s29 = scalar_lea.vmem %s184_s21, 8192 }
  0x34   : > { %p1168_p5 = pneg %p1549_p7  ;;  %p1180_p2 = scmp.ne.s32.totalorder %s184_s21, %s1179_s29 }
  0x35   : > { %s1380_s1 = smov [#allocation2]  }
  0x36   : > { %p1182_p3 = pnand %p1180_p2, %p1168_p5  ;;  %s1184_s23 = sshll.u32 %s1380_s1, 4  ;;  %s1185_s23 = int_to_ptr.vmem [resolvable:$false] %s1184_s23 }
  0x37   : > { %s182_s3 = scalar_lea.hbm %s2048_s0, %s926_s5  ;;  %s1186_s5 = scalar_lea.vmem %s1185_s23, 16384 }
  0x38   : > { %p1183_p8 = pneg %p1182_p3  ;;  %p1187_p9 = scmp.lt.s32.totalorder %s184_s21, %s1185_s23 }
  0x39   : > { %p1188_p11 = scmp.lt.s32.totalorder %s1186_s5, %s1179_s29 }
  0x3b   : > { %p1189_p13 = por %p1188_p11, %p1187_p9 }
  0x3d   : > { %p1190_p6 = pnand %p1189_p13, %p1183_p8 }
  0x3f   : > { %1193 = shalt.err (!%p1190_p6)
}
  0x40   : > { %s1381_s8 = smov 1280   ;;  %s1382_s1 = smov 256  }
  0x41   : > { %s1383_s23 = smov 16   ;;  %s1558_s11 = sadd.s32 4294967295, %s1374_s25  }
  0x42   : > { %1003 = dma.hbm_to_vmem [thread:$0]  (!%p1549_p7), %s182_s3, 8192, %s184_s21, %s170_s26, %s1381_s8, %s1382_s1, %s1383_s23  }
  0x43   : > { %s905_s6 = sadd.s32 4294967294, %s1374_s25   ;;  %s2050_s10 = sadd.s32 1, %s1370_s24 }
  0x44   : > { %s2086_s10 = smov (!%p1482_p0, %s2050_s10), %s1370_s24  ;;  %p64_p6 = scmp.eq.s32.totalorder %s1558_s11, 0 }
  0x45   : > { %s104_s9 = sadd.s32 1, %s1330_s14  ;;  %p39_p7 = scmp.ge.s32.totalorder %s2086_s10, 3 }
  0x46   : > { %p111_p5 = scmp.ne.s32.totalorder %s1330_s14, %s1326_s13  ;;  %p1575_p2 = por %p64_p6, %p63_p12 }
  0x47   : > { %p1584_p0 = por %p91_p4, %p64_p6  ;;  %s2088_s10 = smov (%p39_p7, %s2086_s10), 0 }
  0x48   : > { %2053 = sst [smem:[#allocation19_spill]] %s2088_s10  ;;  %p1595_p3 = por %p111_p5, %p58_p1 }
  0x49   : > { %p117_p12 = scmp.ne.s32.totalorder %s1326_s13, %s1322_s12  ;;  %s74_s7 = ssub.s32 %s1370_s24, %s2088_s10 }
  0x4a   : > { %p143_p8 = scmp.eq.s32.totalorder %s1558_s11, 14  ;;  %s75_s15 = sor.u32 %s74_s7, %s1500_s30 }
  0x4b   : > { %p102_p4 = scmp.eq.s32.totalorder %s74_s7, 0  ;;  %p76_p9 = scmp.eq.s32.totalorder %s75_s15, 0 }
  0x4c   : > { %p1610_p11 = por %p117_p12, %p64_p6  ;;  %s2056_s29 = sadd.s32 1, %s1342_s17 }
  0x4d   : > { %s1615_s26 = scalar_select %p102_p4, %s1330_s14, %s104_s9  }
  0x4e   : > { %s2055_s21 = scalar_select %p1610_p11, 1, 0 }
  0x4f   : > { %s1620_s5 = scalar_select %p76_p9, %s1342_s17, %s2056_s29  }
  0x50   : > { %p1625_p1 = por %p143_p8, %p111_p5  ;;  %p149_p13 = scmp.eq.s32.totalorder %s905_s6, 14 }
  0x51   : > { %s218_s30 = sand.u32 1, %s1330_s14   ;;  %s915_s1 = sshll.u32 %s1370_s24, 4 }
  0x52   : > { %s2057_s8 = scalar_select %p1625_p1, 1, 0 }
  0x53   : > { %p1634_p7 = por %p149_p13, %p117_p12  ;;  %s224_s9 = scalar_lea.hbm %s2025_s2, %s915_s1 }
  0x54   : > { %s219_s0 = scalar_lea.vmem [#allocation7], %s218_s30  ;;  %p2059_p6 = scmp.lt.s32.totalorder %s1374_s25, 15 }
  0x55   : > { %s2058_s23 = scalar_select %p1634_p7, 1, 0 }
  0x56   : > { %s226_s29 = sshll.u32 %s219_s0, 4  ;;  %p1645_p5 = pnand %p2059_p6, %p1595_p3  ;;  %s227_s29 = int_to_ptr.vmem [resolvable:$true] %s226_s29 }
  0x57   : > { %s1207_s6 = scalar_lea.vmem %s227_s29, 16  ;;  %s1384_s24 = smov [#allocation7]  }
  0x58   : > { %p1196_p8 = pneg %p1645_p5  ;;  %p1208_p12 = scmp.ne.s32.totalorder %s227_s29, %s1207_s6 }
  0x59   : > { %s1212_s4 = sshll.u32 %s1384_s24, 4  ;;  %s1213_s4 = int_to_ptr.vmem [resolvable:$false] %s1212_s4 }
  0x5a   : > { %p1210_p4 = pnand %p1208_p12, %p1196_p8  ;;  %s1214_s1 = scalar_lea.vmem %s1213_s4, 32 }
  0x5b   : > { %p1215_p13 = scmp.lt.s32.totalorder %s227_s29, %s1213_s4  ;;  %p1216_p7 = scmp.lt.s32.totalorder %s1214_s1, %s1207_s6 }
  0x5c   : > { %p1211_p9 = pneg %p1210_p4 }
  0x5d   : > { %p1217_p1 = por %p1216_p7, %p1215_p13 }
  0x5f   : > { %p1218_p11 = pnand %p1217_p1, %p1211_p9 }
  0x61   : > { %1221 = shalt.err (!%p1218_p11)
}
  0x62   : > { %1009 = dma.hbm_to_vmem [thread:$0]  (!%p1645_p5), %s224_s9, 16, %s227_s29, %s1517_s22  }
  0x63   : > { %235 = sbr.rel (%p1526_p10) target bundleno = 478 (0x1de), region = 32  ;;  %s237_s0 = sand.u32 (!%p1526_p10), 1, %s1350_s19  }
  0x64   : > { %s917_s18 = sshll.u32 (!%p1526_p10), %s237_s0, 9  ;;  %s238_s30 = scalar_lea.sflag (!%p1526_p10), [#allocation3], %s237_s0 }
  0x65   : > { %s1657_s24 = scalar_lea.vmem (!%p1526_p10), [#allocation2], %s917_s18 }
  0x68   : > { %1305 = dma.done.wait (%p1575_p2), %s238_s30, 8192  }
  0x69   : > { %1307 = vsyncadd (%p1575_p2), %s238_s30, 4294959104  ;;  %s246_s4 = sand.u32 1, %s1558_s11   ;;  %s248_s22 = sand.u32 1, %s1338_s16  }
  0x6a   : > { %s918_s10 = sshll.u32 %s248_s22, 8  ;;  %s247_s27 = scalar_lea.sflag [#allocation6], %s246_s4 }
  0x6b   : > { %s1665_s7 = scalar_lea.vmem [#allocation5], %s918_s10 }
  0x6c   : > { %1309 = dma.done.wait (%p1584_p0), %s247_s27, 4096  }
  0x6d   : > { %1311 = vsyncadd (%p1584_p0), %s247_s27, 4294963200  ;;  %s1672_s15 = sand.u32 1, %s1326_s13   ;;  %p2061_p10 = scmp.ne.s32.totalorder %s2055_s21, 0 }
  0x6e   : > { %s258_s3 = scalar_lea.vmem [#allocation7], %s1672_s15 }
  0x6f   : > { %1313 = dma.done.wait (%p2061_p10), %s247_s27, 16  }
  0x70   : > { %1315 = vsyncadd (%p2061_p10), %s247_s27, 4294967280  ;;  %s919_s11 = sshll.u32 %s1672_s15, 8  ;;  %s2062_s29 = sld [smem:[#allocation13_spill]] }
  0x71   : > { %s1680_s9 = scalar_lea.vmem [#allocation8], %s919_s11 }
  0x76   : > { %p920_p2 = scmp.ne.s32.totalorder %s2062_s29, 0 }
  0x78   : > { %297 = sbr.rel (%p920_p2) target bundleno = 142 (0x8e), region = 48 }
  0x7d   : > { %v921_v0 = vld [vmem:[%s258_s3] ss:$0 sm:$0xff] }
  0x7e   : > { %305 = vst [vmem:[%s1680_s9] sm:$0xff] %v921_v0  ;;  %306 = vst [vmem:[%s1680_s9 + $0x8] sm:$0xff] %v921_v0 }
  0x7f   : > { %307 = vst [vmem:[%s1680_s9 + $0x10] sm:$0xff] %v921_v0  ;;  %308 = vst [vmem:[%s1680_s9 + $0x18] sm:$0xff] %v921_v0 }
  0x80   : > { %309 = vst [vmem:[%s1680_s9 + $0x20] sm:$0xff] %v921_v0  ;;  %310 = vst [vmem:[%s1680_s9 + $0x28] sm:$0xff] %v921_v0 }
  0x81   : > { %311 = vst [vmem:[%s1680_s9 + $0x30] sm:$0xff] %v921_v0  ;;  %312 = vst [vmem:[%s1680_s9 + $0x38] sm:$0xff] %v921_v0 }
  0x82   : > { %313 = vst [vmem:[%s1680_s9 + $0x40] sm:$0xff] %v921_v0  ;;  %314 = vst [vmem:[%s1680_s9 + $0x48] sm:$0xff] %v921_v0 }
  0x83   : > { %315 = vst [vmem:[%s1680_s9 + $0x50] sm:$0xff] %v921_v0  ;;  %316 = vst [vmem:[%s1680_s9 + $0x58] sm:$0xff] %v921_v0 }
  0x84   : > { %317 = vst [vmem:[%s1680_s9 + $0x60] sm:$0xff] %v921_v0  ;;  %318 = vst [vmem:[%s1680_s9 + $0x68] sm:$0xff] %v921_v0 }
  0x85   : > { %319 = vst [vmem:[%s1680_s9 + $0x70] sm:$0xff] %v921_v0  ;;  %320 = vst [vmem:[%s1680_s9 + $0x78] sm:$0xff] %v921_v0 }
  0x86   : > { %321 = vst [vmem:[%s1680_s9 + $0x80] sm:$0xff] %v921_v0  ;;  %322 = vst [vmem:[%s1680_s9 + $0x88] sm:$0xff] %v921_v0 }
  0x87   : > { %323 = vst [vmem:[%s1680_s9 + $0x90] sm:$0xff] %v921_v0  ;;  %324 = vst [vmem:[%s1680_s9 + $0x98] sm:$0xff] %v921_v0 }
  0x88   : > { %325 = vst [vmem:[%s1680_s9 + $0xa0] sm:$0xff] %v921_v0  ;;  %326 = vst [vmem:[%s1680_s9 + $0xa8] sm:$0xff] %v921_v0 }
  0x89   : > { %327 = vst [vmem:[%s1680_s9 + $0xb0] sm:$0xff] %v921_v0  ;;  %328 = vst [vmem:[%s1680_s9 + $0xb8] sm:$0xff] %v921_v0 }
  0x8a   : > { %329 = vst [vmem:[%s1680_s9 + $0xc0] sm:$0xff] %v921_v0  ;;  %330 = vst [vmem:[%s1680_s9 + $0xc8] sm:$0xff] %v921_v0 }
  0x8b   : > { %331 = vst [vmem:[%s1680_s9 + $0xd0] sm:$0xff] %v921_v0  ;;  %332 = vst [vmem:[%s1680_s9 + $0xd8] sm:$0xff] %v921_v0 }
  0x8c   : > { %333 = vst [vmem:[%s1680_s9 + $0xe0] sm:$0xff] %v921_v0  ;;  %334 = vst [vmem:[%s1680_s9 + $0xe8] sm:$0xff] %v921_v0 }
  0x8d   : > { %335 = vst [vmem:[%s1680_s9 + $0xf0] sm:$0xff] %v921_v0  ;;  %336 = vst [vmem:[%s1680_s9 + $0xf8] sm:$0xff] %v921_v0 }
  0x8e PF: > { %v448_v1 = vld [vmem:[%s1665_s7 + $0x78] sm:$0xff]  ;;  %v1385_v2 = vmov 0.0   ;;  %v447_v3 = vld [vmem:[%s1665_s7 + $0x70] sm:$0xff]  ;;  %v446_v4 = vld [vmem:[%s1665_s7 + $0x68] sm:$0xff]  ;;  %s2063_s28 = sld [smem:[#allocation14_spill]]  ;;  %s770_s6 = sshll.u32 %s1680_s9, 4  ;;  %s1944_s6 = int_to_ptr.vmem [resolvable:$true] %s770_s6 }
  0x8f   : > { %465 = vmatprep.subr.mxu0 %v1385_v2  ;;  %927 = vmatprep.subr.mxu1 %v1385_v2  ;;  %v445_v5 = vld [vmem:[%s1665_s7 + $0x60] sm:$0xff]  ;;  %v444_v6 = vld [vmem:[%s1665_s7 + $0x58] sm:$0xff]  ;;  %v443_v7 = vld [vmem:[%s1665_s7 + $0x50] sm:$0xff]  ;;  %s2064_s18 = sld [smem:[#allocation22_spill]]  ;;  %s755_s4 = scalar_lea.sflag [#allocation4], %s1672_s15 }
  0x90   : > { %466 = vmatpush1.msra.mxu0 %v448_v1  ;;  %959 = vmatpush1.msra.mxu1 %v448_v1  ;;  %v442_v8 = vld [vmem:[%s1665_s7 + $0x48] sm:$0xff]  ;;  %v441_v9 = vld [vmem:[%s1665_s7 + $0x40] sm:$0xff]  ;;  %v440_v10 = vld [vmem:[%s1665_s7 + $0x38] sm:$0xff]  ;;  %s1222_s22 = scalar_lea.vmem %s1944_s6, 4096  ;;  %p2066_p3 = scmp.ne.s32.totalorder %s2057_s8, 0 }
  0x91   : > { %467 = vmatprep.subr.mxu0 %v1385_v2  ;;  %928 = vmatprep.subr.mxu1 %v1385_v2  ;;  %v439_v11 = vld [vmem:[%s1665_s7 + $0x30] sm:$0xff]  ;;  %v438_v12 = vld [vmem:[%s1665_s7 + $0x28] sm:$0xff]  ;;  %v437_v13 = vld [vmem:[%s1665_s7 + $0x20] sm:$0xff]  ;;  %p1223_p0 = scmp.ne.s32.totalorder %s1944_s6, %s1222_s22  ;;  %s1386_s10 = smov [#allocation8]  }
  0x92   : > { %468 = vmatpush1.msra.mxu0 %v447_v3  ;;  %960 = vmatpush1.msra.mxu1 %v447_v3  ;;  %v436_v14 = vld [vmem:[%s1665_s7 + $0x18] sm:$0xff]  ;;  %v435_v15 = vld [vmem:[%s1665_s7 + $0x10] sm:$0xff]  ;;  %v434_v16 = vld [vmem:[%s1665_s7 + $0x8] sm:$0xff]  ;;  %s1226_s27 = sshll.u32 %s1386_s10, 4  ;;  %s1227_s27 = int_to_ptr.vmem [resolvable:$false] %s1226_s27 }
  0x93   : > { %469 = vmatprep.subr.mxu0 %v1385_v2  ;;  %929 = vmatprep.subr.mxu1 %v1385_v2  ;;  %v433_v17 = vld [vmem:[%s1665_s7] sm:$0xff]  ;;  %v464_v18 = vld [vmem:[%s1665_s7 + $0xf8] sm:$0xff]  ;;  %v463_v19 = vld [vmem:[%s1665_s7 + $0xf0] sm:$0xff]  ;;  %p1224_p11 = pnand %p1223_p0, %p2066_p3  ;;  %p1229_p7 = scmp.lt.s32.totalorder %s1944_s6, %s1227_s27 }
  0x94   : > { %470 = vmatpush1.msra.mxu0 %v446_v4  ;;  %961 = vmatpush1.msra.mxu1 %v446_v4  ;;  %v462_v20 = vld [vmem:[%s1665_s7 + $0xe8] sm:$0xff]  ;;  %v461_v21 = vld [vmem:[%s1665_s7 + $0xe0] sm:$0xff]  ;;  %v460_v22 = vld [vmem:[%s1665_s7 + $0xd8] sm:$0xff]  ;;  %s923_s21 = sshll.u32 %s2063_s28, 7 }
  0x95   : > { %471 = vmatprep.subr.mxu0 %v1385_v2  ;;  %930 = vmatprep.subr.mxu1 %v1385_v2  ;;  %v459_v23 = vld [vmem:[%s1665_s7 + $0xd0] sm:$0xff]  ;;  %v458_v24 = vld [vmem:[%s1665_s7 + $0xc8] sm:$0xff]  ;;  %v457_v25 = vld [vmem:[%s1665_s7 + $0xc0] sm:$0xff]  ;;  %s2065_s30 = smov %s2064_s18  ;;  %p1225_p1 = pneg %p1224_p11 }
  0x96   : > { %472 = vmatpush1.msra.mxu0 %v445_v5  ;;  %962 = vmatpush1.msra.mxu1 %v445_v5  ;;  %v456_v26 = vld [vmem:[%s1665_s7 + $0xb8] sm:$0xff]  ;;  %v455_v27 = vld [vmem:[%s1665_s7 + $0xb0] sm:$0xff]  ;;  %v454_v28 = vld [vmem:[%s1665_s7 + $0xa8] sm:$0xff] }
  0x97   : > { %473 = vmatprep.subr.mxu0 %v1385_v2  ;;  %931 = vmatprep.subr.mxu1 %v1385_v2  ;;  %v453_v29 = vld [vmem:[%s1665_s7 + $0xa0] sm:$0xff]  ;;  %v452_v30 = vld [vmem:[%s1665_s7 + $0x98] sm:$0xff]  ;;  %v451_v31 = vld [vmem:[%s1665_s7 + $0x90] sm:$0xff] }
  0x98   : > { %474 = vmatpush1.msra.mxu0 %v444_v6  ;;  %963 = vmatpush1.msra.mxu1 %v444_v6  ;;  %v450_v32 = vld [vmem:[%s1665_s7 + $0x88] sm:$0xff]  ;;  %v449_v33 = vld [vmem:[%s1665_s7 + $0x80] sm:$0xff]  ;;  %v372_v38 = vld [vmem:[%s1657_s24 + $0x18] sm:$0xff]  ;;  %s1228_s7 = scalar_lea.vmem %s1227_s27, 8192 }
  0x99   : > { %475 = vmatprep.subr.mxu0 %v1385_v2  ;;  %932 = vmatprep.subr.mxu1 %v1385_v2  ;;  %v370_v34 = vld [vmem:[%s1657_s24 + $0x8] sm:$0xff]  ;;  %v369_v36 = vld [vmem:[%s1657_s24] sm:$0xff]  ;;  %v404_v39 = vld [vmem:[%s1657_s24 + $0x118] sm:$0xff]  ;;  %p1230_p6 = scmp.lt.s32.totalorder %s1228_s7, %s1222_s22 }
  0x9a   : > { %476 = vmatpush1.msra.mxu0 %v443_v7  ;;  %964 = vmatpush1.msra.mxu1 %v443_v7  ;;  %v402_v35 = vld [vmem:[%s1657_s24 + $0x108] sm:$0xff]  ;;  %v401_v37 = vld [vmem:[%s1657_s24 + $0x100] sm:$0xff]  ;;  %v371_v40 = vld [vmem:[%s1657_s24 + $0x10] sm:$0xff] }
  0x9b   : > { %477 = vmatprep.subr.mxu0 %v1385_v2  ;;  %933 = vmatprep.subr.mxu1 %v1385_v2  ;;  %v403_v41 = vld [vmem:[%s1657_s24 + $0x110] sm:$0xff]  ;;  %v374_v42 = vld [vmem:[%s1657_s24 + $0x28] sm:$0xff]  ;;  %v373_v44 = vld [vmem:[%s1657_s24 + $0x20] sm:$0xff]  ;;  %p1231_p5 = por %p1230_p6, %p1229_p7 }
  0x9c   : > { %478 = vmatpush1.msra.mxu0 %v442_v8  ;;  %965 = vmatpush1.msra.mxu1 %v442_v8  ;;  %v406_v43 = vld [vmem:[%s1657_s24 + $0x128] sm:$0xff]  ;;  %v405_v45 = vld [vmem:[%s1657_s24 + $0x120] sm:$0xff]  ;;  %v376_v46 = vld [vmem:[%s1657_s24 + $0x38] sm:$0xff] }
  0x9d   : > { %479 = vmatprep.subr.mxu0 %v1385_v2  ;;  %934 = vmatprep.subr.mxu1 %v1385_v2  ;;  %v408_v47 = vld [vmem:[%s1657_s24 + $0x138] sm:$0xff]  ;;  %v375_v48 = vld [vmem:[%s1657_s24 + $0x30] sm:$0xff]  ;;  %v378_v50 = vld [vmem:[%s1657_s24 + $0x48] sm:$0xff]  ;;  %p1232_p8 = pnand %p1231_p5, %p1225_p1 }
  0x9e   : > { %480 = vmatpush1.msra.mxu0 %v441_v9  ;;  %966 = vmatpush1.msra.mxu1 %v441_v9  ;;  %v407_v49 = vld [vmem:[%s1657_s24 + $0x130] sm:$0xff]  ;;  %v410_v51 = vld [vmem:[%s1657_s24 + $0x148] sm:$0xff]  ;;  %v377_v52 = vld [vmem:[%s1657_s24 + $0x40] sm:$0xff] }
  0x9f   : > { %481 = vmatprep.subr.mxu0 %v1385_v2  ;;  %935 = vmatprep.subr.mxu1 %v1385_v2  ;;  %v409_v53 = vld [vmem:[%s1657_s24 + $0x140] sm:$0xff]  ;;  %v380_v54 = vld [vmem:[%s1657_s24 + $0x58] sm:$0xff]  ;;  %v379_v56 = vld [vmem:[%s1657_s24 + $0x50] sm:$0xff] }
  0xa0   : > { %482 = vmatpush1.msra.mxu0 %v440_v10  ;;  %967 = vmatpush1.msra.mxu1 %v440_v10  ;;  %v412_v55 = vld [vmem:[%s1657_s24 + $0x158] sm:$0xff]  ;;  %v411_v57 = vld [vmem:[%s1657_s24 + $0x150] sm:$0xff]  ;;  %v382_v58 = vld [vmem:[%s1657_s24 + $0x68] sm:$0xff] }
  0xa1   : > { %483 = vmatprep.subr.mxu0 %v1385_v2  ;;  %936 = vmatprep.subr.mxu1 %v1385_v2  ;;  %v414_v59 = vld [vmem:[%s1657_s24 + $0x168] sm:$0xff]  ;;  %v381_v60 = vld [vmem:[%s1657_s24 + $0x60] sm:$0xff]  ;;  %v384_v62 = vld [vmem:[%s1657_s24 + $0x78] sm:$0xff] }
  0xa2   : > { %484 = vmatpush1.msra.mxu0 %v439_v11  ;;  %968 = vmatpush1.msra.mxu1 %v439_v11  ;;  %v413_v61 = vld [vmem:[%s1657_s24 + $0x160] sm:$0xff]  ;;  %v416_v63 = vld [vmem:[%s1657_s24 + $0x178] sm:$0xff]  ;;  %v383_v0 = vld [vmem:[%s1657_s24 + $0x70] sm:$0xff] }
  0xa3   : > { %485 = vmatprep.subr.mxu0 %v1385_v2  ;;  %937 = vmatprep.subr.mxu1 %v1385_v2  ;;  %v415_v1 = vld [vmem:[%s1657_s24 + $0x170] sm:$0xff]  ;;  %v418_v3 = vld [vmem:[%s1657_s24 + $0x188] sm:$0xff]  ;;  %v385_v4 = vld [vmem:[%s1657_s24 + $0x80] sm:$0xff] }
  0xa4   : > { %486 = vmatpush1.msra.mxu0 %v438_v12  ;;  %969 = vmatpush1.msra.mxu1 %v438_v12  ;;  %v417_v5 = vld [vmem:[%s1657_s24 + $0x180] sm:$0xff]  ;;  %v388_v6 = vld [vmem:[%s1657_s24 + $0x98] sm:$0xff]  ;;  %v387_v8 = vld [vmem:[%s1657_s24 + $0x90] sm:$0xff] }
  0xa5   : > { %487 = vmatprep.subr.mxu0 %v1385_v2  ;;  %938 = vmatprep.subr.mxu1 %v1385_v2  ;;  %v420_v7 = vld [vmem:[%s1657_s24 + $0x198] sm:$0xff]  ;;  %v419_v9 = vld [vmem:[%s1657_s24 + $0x190] sm:$0xff]  ;;  %v390_v10 = vld [vmem:[%s1657_s24 + $0xa8] sm:$0xff] }
  0xa6   : > { %488 = vmatpush1.msra.mxu0 %v437_v13  ;;  %970 = vmatpush1.msra.mxu1 %v437_v13  ;;  %v422_v11 = vld [vmem:[%s1657_s24 + $0x1a8] sm:$0xff]  ;;  %v389_v12 = vld [vmem:[%s1657_s24 + $0xa0] sm:$0xff] }
  0xa7   : > { %489 = vmatprep.subr.mxu0 %v1385_v2  ;;  %939 = vmatprep.subr.mxu1 %v1385_v2  ;;  %v421_v13 = vld [vmem:[%s1657_s24 + $0x1a0] sm:$0xff] }
  0xa8   : > { %490 = vmatpush1.msra.mxu0 %v436_v14  ;;  %971 = vmatpush1.msra.mxu1 %v436_v14  ;;  %v392_v14 = vld [vmem:[%s1657_s24 + $0xb8] sm:$0xff] }
  0xa9   : > { %491 = vmatprep.subr.mxu0 %v1385_v2  ;;  %940 = vmatprep.subr.mxu1 %v1385_v2 }
  0xaa   : > { %492 = vmatpush1.msra.mxu0 %v435_v15  ;;  %972 = vmatpush1.msra.mxu1 %v435_v15  ;;  %v424_v15 = vld [vmem:[%s1657_s24 + $0x1b8] sm:$0xff] }
  0xab   : > { %493 = vmatprep.subr.mxu0 %v1385_v2  ;;  %941 = vmatprep.subr.mxu1 %v1385_v2 }
  0xac   : > { %494 = vmatpush1.msra.mxu0 %v434_v16  ;;  %973 = vmatpush1.msra.mxu1 %v434_v16  ;;  %v391_v16 = vld [vmem:[%s1657_s24 + $0xb0] sm:$0xff] }
  0xad   : > { %495 = vmatprep.subr.mxu0 %v1385_v2  ;;  %942 = vmatprep.subr.mxu1 %v1385_v2 }
  0xae   : > { %496 = vmatpush1.msra.mxu0 %v433_v17  ;;  %974 = vmatpush1.msra.mxu1 %v433_v17  ;;  %v423_v17 = vld [vmem:[%s1657_s24 + $0x1b0] sm:$0xff] }
  0xaf   : > { %497 = vmatprep.subr.mxu0 %v1385_v2  ;;  %943 = vmatprep.subr.mxu1 %v1385_v2 }
  0xb0   : > { %498 = vmatpush2.msra.mxu0 %v464_v18  ;;  %975 = vmatpush2.msra.mxu1 %v464_v18  ;;  %v394_v18 = vld [vmem:[%s1657_s24 + $0xc8] sm:$0xff] }
  0xb1   : > { %499 = vmatprep.subr.mxu0 %v1385_v2  ;;  %944 = vmatprep.subr.mxu1 %v1385_v2 }
  0xb2   : > { %500 = vmatpush2.msra.mxu0 %v463_v19  ;;  %976 = vmatpush2.msra.mxu1 %v463_v19  ;;  %v426_v19 = vld [vmem:[%s1657_s24 + $0x1c8] sm:$0xff] }
  0xb3   : > { %501 = vmatprep.subr.mxu0 %v1385_v2  ;;  %945 = vmatprep.subr.mxu1 %v1385_v2 }
  0xb4   : > { %502 = vmatpush2.msra.mxu0 %v462_v20  ;;  %977 = vmatpush2.msra.mxu1 %v462_v20  ;;  %v393_v20 = vld [vmem:[%s1657_s24 + $0xc0] sm:$0xff] }
  0xb5   : > { %503 = vmatprep.subr.mxu0 %v1385_v2  ;;  %946 = vmatprep.subr.mxu1 %v1385_v2 }
  0xb6   : > { %504 = vmatpush2.msra.mxu0 %v461_v21  ;;  %978 = vmatpush2.msra.mxu1 %v461_v21  ;;  %v425_v21 = vld [vmem:[%s1657_s24 + $0x1c0] sm:$0xff] }
  0xb7   : > { %505 = vmatprep.subr.mxu0 %v1385_v2  ;;  %947 = vmatprep.subr.mxu1 %v1385_v2 }
  0xb8   : > { %506 = vmatpush2.msra.mxu0 %v460_v22  ;;  %979 = vmatpush2.msra.mxu1 %v460_v22  ;;  %v396_v22 = vld [vmem:[%s1657_s24 + $0xd8] sm:$0xff] }
  0xb9   : > { %507 = vmatprep.subr.mxu0 %v1385_v2  ;;  %948 = vmatprep.subr.mxu1 %v1385_v2 }
  0xba   : > { %508 = vmatpush2.msra.mxu0 %v459_v23  ;;  %980 = vmatpush2.msra.mxu1 %v459_v23  ;;  %v428_v23 = vld [vmem:[%s1657_s24 + $0x1d8] sm:$0xff] }
  0xbb   : > { %509 = vmatprep.subr.mxu0 %v1385_v2  ;;  %949 = vmatprep.subr.mxu1 %v1385_v2 }
  0xbc   : > { %510 = vmatpush2.msra.mxu0 %v458_v24  ;;  %981 = vmatpush2.msra.mxu1 %v458_v24  ;;  %v395_v24 = vld [vmem:[%s1657_s24 + $0xd0] sm:$0xff] }
  0xbd   : > { %511 = vmatprep.subr.mxu0 %v1385_v2  ;;  %950 = vmatprep.subr.mxu1 %v1385_v2 }
  0xbe   : > { %512 = vmatpush2.msra.mxu0 %v457_v25  ;;  %982 = vmatpush2.msra.mxu1 %v457_v25  ;;  %v427_v25 = vld [vmem:[%s1657_s24 + $0x1d0] sm:$0xff] }
  0xbf   : > { %513 = vmatprep.subr.mxu0 %v1385_v2  ;;  %951 = vmatprep.subr.mxu1 %v1385_v2 }
  0xc0   : > { %514 = vmatpush2.msra.mxu0 %v456_v26  ;;  %983 = vmatpush2.msra.mxu1 %v456_v26  ;;  %v398_v26 = vld [vmem:[%s1657_s24 + $0xe8] sm:$0xff] }
  0xc1   : > { %515 = vmatprep.subr.mxu0 %v1385_v2  ;;  %952 = vmatprep.subr.mxu1 %v1385_v2 }
  0xc2   : > { %516 = vmatpush2.msra.mxu0 %v455_v27  ;;  %984 = vmatpush2.msra.mxu1 %v455_v27  ;;  %v430_v27 = vld [vmem:[%s1657_s24 + $0x1e8] sm:$0xff] }
  0xc3   : > { %517 = vmatprep.subr.mxu0 %v1385_v2  ;;  %953 = vmatprep.subr.mxu1 %v1385_v2 }
  0xc4   : > { %518 = vmatpush2.msra.mxu0 %v454_v28  ;;  %985 = vmatpush2.msra.mxu1 %v454_v28  ;;  %v397_v28 = vld [vmem:[%s1657_s24 + $0xe0] sm:$0xff] }
  0xc5   : > { %519 = vmatprep.subr.mxu0 %v1385_v2  ;;  %954 = vmatprep.subr.mxu1 %v1385_v2 }
  0xc6   : > { %520 = vmatpush2.msra.mxu0 %v453_v29  ;;  %986 = vmatpush2.msra.mxu1 %v453_v29  ;;  %v429_v29 = vld [vmem:[%s1657_s24 + $0x1e0] sm:$0xff] }
  0xc7   : > { %521 = vmatprep.subr.mxu0 %v1385_v2  ;;  %955 = vmatprep.subr.mxu1 %v1385_v2 }
  0xc8   : > { %522 = vmatpush2.msra.mxu0 %v452_v30  ;;  %987 = vmatpush2.msra.mxu1 %v452_v30  ;;  %v400_v30 = vld [vmem:[%s1657_s24 + $0xf8] sm:$0xff] }
  0xc9   : > { %523 = vmatprep.subr.mxu0 %v1385_v2  ;;  %956 = vmatprep.subr.mxu1 %v1385_v2 }
  0xca   : > { %524 = vmatpush2.msra.mxu0 %v451_v31  ;;  %988 = vmatpush2.msra.mxu1 %v451_v31  ;;  %v432_v31 = vld [vmem:[%s1657_s24 + $0x1f8] sm:$0xff] }
  0xcb   : > { %525 = vmatprep.subr.mxu0 %v1385_v2  ;;  %957 = vmatprep.subr.mxu1 %v1385_v2 }
  0xcc   : > { %526 = vmatpush2.msra.mxu0 %v450_v32  ;;  %989 = vmatpush2.msra.mxu1 %v450_v32  ;;  %v399_v32 = vld [vmem:[%s1657_s24 + $0xf0] sm:$0xff] }
  0xcd   : > { %527 = vmatprep.subr.mxu0 %v1385_v2  ;;  %958 = vmatprep.subr.mxu1 %v1385_v2  ;;  %v386_v2 = vld [vmem:[%s1657_s24 + $0x88] sm:$0xff] }
  0xce   : > { %528 = vmatpush2.msra.mxu0 %v449_v33  ;;  %990 = vmatpush2.msra.mxu1 %v449_v33  ;;  %v431_v33 = vld [vmem:[%s1657_s24 + $0x1f0] sm:$0xff]  ;;  %s1942_s24 = scalar_lea.hbm %s2064_s18, %s923_s21 }
  0xcf   : > { %529 = vmatprep.mubr.f32.mxu0 %v370_v34  ;;  %609 = vmatprep.mubr.f32.mxu1 %v402_v35  ;;  %v337_v34 = vld [vmem:[%s1680_s9] sm:$0xff] }
  0xd0   : > { %530 = vmatmul.mubr.f32.vlgmr.msra.gmra.mxu0 %v369_v36  ;;  %610 = vmatmul.mubr.f32.vlgmr.msra.gmra.mxu1 %v401_v37  ;;  %v353_v35 = vld [vmem:[%s1680_s9 + $0x80] sm:$0xff] }
  0xd1   : > { %534 = vmatprep.mubr.f32.mxu0 %v372_v38  ;;  %614 = vmatprep.mubr.f32.mxu1 %v404_v39 }
  0xd4   : > { %535 = vmatmul.mubr.f32.gmra.mxu0 %v371_v40  ;;  %615 = vmatmul.mubr.f32.gmra.mxu1 %v403_v41 }
  0xd5   : > { %539 = vmatprep.mubr.f32.mxu0 %v374_v42  ;;  %619 = vmatprep.mubr.f32.mxu1 %v406_v43  ;;  %v338_v42 = vld [vmem:[%s1680_s9 + $0x8] sm:$0xff] }
  0xd6   : > { %v354_v43 = vld [vmem:[%s1680_s9 + $0x88] sm:$0xff] }
  0xd8   : > { %540 = vmatmul.mubr.f32.gmra.mxu0 %v373_v44  ;;  %620 = vmatmul.mubr.f32.gmra.mxu1 %v405_v45 }
  0xd9   : > { %544 = vmatprep.mubr.f32.mxu0 %v376_v46  ;;  %624 = vmatprep.mubr.f32.mxu1 %v408_v47 }
  0xdc   : > { %545 = vmatmul.mubr.f32.gmra.mxu0 %v375_v48  ;;  %625 = vmatmul.mubr.f32.gmra.mxu1 %v407_v49 }
  0xdd   : > { %549 = vmatprep.mubr.f32.mxu0 %v378_v50  ;;  %629 = vmatprep.mubr.f32.mxu1 %v410_v51  ;;  %v339_v50 = vld [vmem:[%s1680_s9 + $0x10] sm:$0xff] }
  0xde   : > { %v355_v51 = vld [vmem:[%s1680_s9 + $0x90] sm:$0xff] }
  0xe0   : > { %550 = vmatmul.mubr.f32.gmra.mxu0 %v377_v52  ;;  %630 = vmatmul.mubr.f32.gmra.mxu1 %v409_v53 }
  0xe1   : > { %554 = vmatprep.mubr.f32.mxu0 %v380_v54  ;;  %634 = vmatprep.mubr.f32.mxu1 %v412_v55 }
  0xe4   : > { %555 = vmatmul.mubr.f32.gmra.mxu0 %v379_v56  ;;  %635 = vmatmul.mubr.f32.gmra.mxu1 %v411_v57 }
  0xe5   : > { %559 = vmatprep.mubr.f32.mxu0 %v382_v58  ;;  %639 = vmatprep.mubr.f32.mxu1 %v414_v59  ;;  %v340_v58 = vld [vmem:[%s1680_s9 + $0x18] sm:$0xff] }
  0xe6   : > { %v356_v59 = vld [vmem:[%s1680_s9 + $0x98] sm:$0xff] }
  0xe8   : > { %560 = vmatmul.mubr.f32.gmra.mxu0 %v381_v60  ;;  %640 = vmatmul.mubr.f32.gmra.mxu1 %v413_v61 }
  0xe9   : > { %564 = vmatprep.mubr.f32.mxu0 %v384_v62  ;;  %644 = vmatprep.mubr.f32.mxu1 %v416_v63 }
  0xec   : > { %565 = vmatmul.mubr.f32.gmra.mxu0 %v383_v0  ;;  %645 = vmatmul.mubr.f32.gmra.mxu1 %v415_v1 }
  0xed   : > { %569 = vmatprep.mubr.f32.mxu0 %v386_v2  ;;  %649 = vmatprep.mubr.f32.mxu1 %v418_v3  ;;  %v341_v2 = vld [vmem:[%s1680_s9 + $0x20] sm:$0xff] }
  0xee   : > { %v357_v3 = vld [vmem:[%s1680_s9 + $0xa0] sm:$0xff] }
  0xf0   : > { %570 = vmatmul.mubr.f32.gmra.mxu0 %v385_v4  ;;  %650 = vmatmul.mubr.f32.gmra.mxu1 %v417_v5 }
  0xf1   : > { %574 = vmatprep.mubr.f32.mxu0 %v388_v6  ;;  %654 = vmatprep.mubr.f32.mxu1 %v420_v7 }
  0xf4   : > { %575 = vmatmul.mubr.f32.gmra.mxu0 %v387_v8  ;;  %655 = vmatmul.mubr.f32.gmra.mxu1 %v419_v9 }
  0xf5   : > { %579 = vmatprep.mubr.f32.mxu0 %v390_v10  ;;  %659 = vmatprep.mubr.f32.mxu1 %v422_v11  ;;  %v342_v10 = vld [vmem:[%s1680_s9 + $0x28] sm:$0xff] }
  0xf6   : > { %v358_v11 = vld [vmem:[%s1680_s9 + $0xa8] sm:$0xff] }
  0xf8   : > { %580 = vmatmul.mubr.f32.gmra.mxu0 %v389_v12  ;;  %660 = vmatmul.mubr.f32.gmra.mxu1 %v421_v13 }
  0xf9   : > { %584 = vmatprep.mubr.f32.mxu0 %v392_v14  ;;  %664 = vmatprep.mubr.f32.mxu1 %v424_v15 }
  0xfc   : > { %585 = vmatmul.mubr.f32.gmra.mxu0 %v391_v16  ;;  %665 = vmatmul.mubr.f32.gmra.mxu1 %v423_v17 }
  0xfd   : > { %589 = vmatprep.mubr.f32.mxu0 %v394_v18  ;;  %669 = vmatprep.mubr.f32.mxu1 %v426_v19  ;;  %v343_v18 = vld [vmem:[%s1680_s9 + $0x30] sm:$0xff] }
  0xfe   : > { %v359_v19 = vld [vmem:[%s1680_s9 + $0xb0] sm:$0xff] }
 0x100   : > { %590 = vmatmul.mubr.f32.gmra.mxu0 %v393_v20  ;;  %670 = vmatmul.mubr.f32.gmra.mxu1 %v425_v21 }
 0x101   : > { %594 = vmatprep.mubr.f32.mxu0 %v396_v22  ;;  %674 = vmatprep.mubr.f32.mxu1 %v428_v23 }
 0x104   : > { %595 = vmatmul.mubr.f32.gmra.mxu0 %v395_v24  ;;  %675 = vmatmul.mubr.f32.gmra.mxu1 %v427_v25 }
 0x105   : > { %599 = vmatprep.mubr.f32.mxu0 %v398_v26  ;;  %679 = vmatprep.mubr.f32.mxu1 %v430_v27  ;;  %v344_v26 = vld [vmem:[%s1680_s9 + $0x38] sm:$0xff] }
 0x106   : > { %v360_v27 = vld [vmem:[%s1680_s9 + $0xb8] sm:$0xff] }
 0x108   : > { %600 = vmatmul.mubr.f32.gmra.mxu0 %v397_v28  ;;  %680 = vmatmul.mubr.f32.gmra.mxu1 %v429_v29 }
 0x109   : > { %604 = vmatprep.mubr.f32.mxu0 %v400_v30  ;;  %684 = vmatprep.mubr.f32.mxu1 %v432_v31 }
 0x10c   : > { %605 = vmatmul.mubr.f32.gmra.mxu0 %v399_v32  ;;  %685 = vmatmul.mubr.f32.gmra.mxu1 %v431_v33 }
 0x190   : > { %v531_v36 = vpop.f32.mrf.mxu0  ;;  %v611_v37 = vpop.f32.mrf.mxu1 }
 0x191   : > { %v690_v38 = vadd.f32 %v531_v36, %v337_v34  ;;  %v706_v39 = vadd.f32 %v611_v37, %v353_v35  ;;  %v345_v34 = vld [vmem:[%s1680_s9 + $0x40] sm:$0xff] }
 0x192   : > { %v533_v40 = vpop.f32.mrf.mxu0  ;;  %v613_v41 = vpop.f32.mrf.mxu1  ;;  %v361_v35 = vld [vmem:[%s1680_s9 + $0xc0] sm:$0xff] }
 0x193   : > { %722 = vst [vmem:[%s1680_s9] sm:$0xff] %v690_v38  ;;  %738 = vst [vmem:[%s1680_s9 + $0x80] sm:$0xff] %v706_v39 }
 0x194   : > { %v536_v44 = vpop.f32.mrf.mxu0  ;;  %v616_v45 = vpop.f32.mrf.mxu1 }
 0x195   : > { %v691_v46 = vadd.f32 %v536_v44, %v338_v42  ;;  %v707_v47 = vadd.f32 %v616_v45, %v354_v43  ;;  %v346_v42 = vld [vmem:[%s1680_s9 + $0x48] sm:$0xff] }
 0x196   : > { %v538_v48 = vpop.f32.mrf.mxu0  ;;  %v618_v49 = vpop.f32.mrf.mxu1  ;;  %v362_v43 = vld [vmem:[%s1680_s9 + $0xc8] sm:$0xff] }
 0x197   : > { %723 = vst [vmem:[%s1680_s9 + $0x8] sm:$0xff] %v691_v46  ;;  %739 = vst [vmem:[%s1680_s9 + $0x88] sm:$0xff] %v707_v47 }
 0x198   : > { %v541_v52 = vpop.f32.mrf.mxu0  ;;  %v621_v53 = vpop.f32.mrf.mxu1 }
 0x199   : > { %v692_v54 = vadd.f32 %v541_v52, %v339_v50  ;;  %v708_v55 = vadd.f32 %v621_v53, %v355_v51  ;;  %v347_v50 = vld [vmem:[%s1680_s9 + $0x50] sm:$0xff] }
 0x19a   : > { %v543_v56 = vpop.f32.mrf.mxu0  ;;  %v623_v57 = vpop.f32.mrf.mxu1  ;;  %v363_v51 = vld [vmem:[%s1680_s9 + $0xd0] sm:$0xff] }
 0x19b   : > { %724 = vst [vmem:[%s1680_s9 + $0x10] sm:$0xff] %v692_v54  ;;  %740 = vst [vmem:[%s1680_s9 + $0x90] sm:$0xff] %v708_v55 }
 0x19c   : > { %v546_v60 = vpop.f32.mrf.mxu0  ;;  %v626_v61 = vpop.f32.mrf.mxu1 }
 0x19d   : > { %v693_v62 = vadd.f32 %v546_v60, %v340_v58  ;;  %v709_v63 = vadd.f32 %v626_v61, %v356_v59  ;;  %v348_v58 = vld [vmem:[%s1680_s9 + $0x58] sm:$0xff] }
 0x19e   : > { %v548_v0 = vpop.f32.mrf.mxu0  ;;  %v628_v1 = vpop.f32.mrf.mxu1  ;;  %v364_v59 = vld [vmem:[%s1680_s9 + $0xd8] sm:$0xff] }
 0x19f   : > { %725 = vst [vmem:[%s1680_s9 + $0x18] sm:$0xff] %v693_v62  ;;  %741 = vst [vmem:[%s1680_s9 + $0x98] sm:$0xff] %v709_v63 }
 0x1a0   : > { %v551_v4 = vpop.f32.mrf.mxu0  ;;  %v631_v5 = vpop.f32.mrf.mxu1 }
 0x1a1   : > { %v694_v6 = vadd.f32 %v551_v4, %v341_v2  ;;  %v710_v7 = vadd.f32 %v631_v5, %v357_v3  ;;  %v349_v2 = vld [vmem:[%s1680_s9 + $0x60] sm:$0xff] }
 0x1a2   : > { %v553_v8 = vpop.f32.mrf.mxu0  ;;  %v633_v9 = vpop.f32.mrf.mxu1  ;;  %v365_v3 = vld [vmem:[%s1680_s9 + $0xe0] sm:$0xff] }
 0x1a3   : > { %726 = vst [vmem:[%s1680_s9 + $0x20] sm:$0xff] %v694_v6  ;;  %742 = vst [vmem:[%s1680_s9 + $0xa0] sm:$0xff] %v710_v7 }
 0x1a4   : > { %v556_v12 = vpop.f32.mrf.mxu0  ;;  %v636_v13 = vpop.f32.mrf.mxu1 }
 0x1a5   : > { %v695_v14 = vadd.f32 %v556_v12, %v342_v10  ;;  %v711_v15 = vadd.f32 %v636_v13, %v358_v11  ;;  %v350_v10 = vld [vmem:[%s1680_s9 + $0x68] sm:$0xff] }
 0x1a6   : > { %v558_v16 = vpop.f32.mrf.mxu0  ;;  %v638_v17 = vpop.f32.mrf.mxu1  ;;  %v366_v11 = vld [vmem:[%s1680_s9 + $0xe8] sm:$0xff] }
 0x1a7   : > { %727 = vst [vmem:[%s1680_s9 + $0x28] sm:$0xff] %v695_v14  ;;  %743 = vst [vmem:[%s1680_s9 + $0xa8] sm:$0xff] %v711_v15 }
 0x1a8   : > { %v561_v20 = vpop.f32.mrf.mxu0  ;;  %v641_v21 = vpop.f32.mrf.mxu1 }
 0x1a9   : > { %v696_v22 = vadd.f32 %v561_v20, %v343_v18  ;;  %v712_v23 = vadd.f32 %v641_v21, %v359_v19  ;;  %v351_v18 = vld [vmem:[%s1680_s9 + $0x70] sm:$0xff] }
 0x1aa   : > { %v563_v24 = vpop.f32.mrf.mxu0  ;;  %v643_v25 = vpop.f32.mrf.mxu1  ;;  %v367_v19 = vld [vmem:[%s1680_s9 + $0xf0] sm:$0xff] }
 0x1ab   : > { %728 = vst [vmem:[%s1680_s9 + $0x30] sm:$0xff] %v696_v22  ;;  %744 = vst [vmem:[%s1680_s9 + $0xb0] sm:$0xff] %v712_v23 }
 0x1ac   : > { %v566_v28 = vpop.f32.mrf.mxu0  ;;  %v646_v29 = vpop.f32.mrf.mxu1 }
 0x1ad   : > { %v697_v30 = vadd.f32 %v566_v28, %v344_v26  ;;  %v713_v31 = vadd.f32 %v646_v29, %v360_v27  ;;  %v352_v26 = vld [vmem:[%s1680_s9 + $0x78] sm:$0xff] }
 0x1ae   : > { %v568_v32 = vpop.f32.mrf.mxu0  ;;  %v648_v33 = vpop.f32.mrf.mxu1  ;;  %v368_v27 = vld [vmem:[%s1680_s9 + $0xf8] sm:$0xff] }
 0x1af   : > { %729 = vst [vmem:[%s1680_s9 + $0x38] sm:$0xff] %v697_v30  ;;  %745 = vst [vmem:[%s1680_s9 + $0xb8] sm:$0xff] %v713_v31 }
 0x1b0   : > { %v571_v36 = vpop.f32.mrf.mxu0  ;;  %v651_v37 = vpop.f32.mrf.mxu1 }
 0x1b1   : > { %v698_v38 = vadd.f32 %v571_v36, %v345_v34  ;;  %v714_v39 = vadd.f32 %v651_v37, %v361_v35 }
 0x1b2   : > { %v573_v40 = vpop.f32.mrf.mxu0  ;;  %v653_v41 = vpop.f32.mrf.mxu1 }
 0x1b3   : > { %730 = vst [vmem:[%s1680_s9 + $0x40] sm:$0xff] %v698_v38  ;;  %746 = vst [vmem:[%s1680_s9 + $0xc0] sm:$0xff] %v714_v39 }
 0x1b4   : > { %v576_v44 = vpop.f32.mrf.mxu0  ;;  %v656_v45 = vpop.f32.mrf.mxu1 }
 0x1b5   : > { %v699_v46 = vadd.f32 %v576_v44, %v346_v42  ;;  %v715_v47 = vadd.f32 %v656_v45, %v362_v43 }
 0x1b6   : > { %v578_v48 = vpop.f32.mrf.mxu0  ;;  %v658_v49 = vpop.f32.mrf.mxu1 }
 0x1b7   : > { %731 = vst [vmem:[%s1680_s9 + $0x48] sm:$0xff] %v699_v46  ;;  %747 = vst [vmem:[%s1680_s9 + $0xc8] sm:$0xff] %v715_v47 }
 0x1b8   : > { %v581_v52 = vpop.f32.mrf.mxu0  ;;  %v661_v53 = vpop.f32.mrf.mxu1 }
 0x1b9   : > { %v700_v54 = vadd.f32 %v581_v52, %v347_v50  ;;  %v716_v55 = vadd.f32 %v661_v53, %v363_v51 }
 0x1ba   : > { %v583_v56 = vpop.f32.mrf.mxu0  ;;  %v663_v57 = vpop.f32.mrf.mxu1 }
 0x1bb   : > { %732 = vst [vmem:[%s1680_s9 + $0x50] sm:$0xff] %v700_v54  ;;  %748 = vst [vmem:[%s1680_s9 + $0xd0] sm:$0xff] %v716_v55 }
 0x1bc   : > { %v586_v60 = vpop.f32.mrf.mxu0  ;;  %v666_v61 = vpop.f32.mrf.mxu1 }
 0x1bd   : > { %v701_v62 = vadd.f32 %v586_v60, %v348_v58  ;;  %v717_v63 = vadd.f32 %v666_v61, %v364_v59 }
 0x1be   : > { %v588_v0 = vpop.f32.mrf.mxu0  ;;  %v668_v1 = vpop.f32.mrf.mxu1 }
 0x1bf   : > { %733 = vst [vmem:[%s1680_s9 + $0x58] sm:$0xff] %v701_v62  ;;  %749 = vst [vmem:[%s1680_s9 + $0xd8] sm:$0xff] %v717_v63 }
 0x1c0   : > { %v591_v4 = vpop.f32.mrf.mxu0  ;;  %v671_v5 = vpop.f32.mrf.mxu1 }
 0x1c1   : > { %v702_v6 = vadd.f32 %v591_v4, %v349_v2  ;;  %v718_v7 = vadd.f32 %v671_v5, %v365_v3 }
 0x1c2   : > { %v593_v8 = vpop.f32.mrf.mxu0  ;;  %v673_v9 = vpop.f32.mrf.mxu1 }
 0x1c3   : > { %734 = vst [vmem:[%s1680_s9 + $0x60] sm:$0xff] %v702_v6  ;;  %750 = vst [vmem:[%s1680_s9 + $0xe0] sm:$0xff] %v718_v7 }
 0x1c4   : > { %v596_v12 = vpop.f32.mrf.mxu0  ;;  %v676_v13 = vpop.f32.mrf.mxu1 }
 0x1c5   : > { %v703_v14 = vadd.f32 %v596_v12, %v350_v10  ;;  %v719_v15 = vadd.f32 %v676_v13, %v366_v11 }
 0x1c6   : > { %v598_v16 = vpop.f32.mrf.mxu0  ;;  %v678_v17 = vpop.f32.mrf.mxu1 }
 0x1c7   : > { %735 = vst [vmem:[%s1680_s9 + $0x68] sm:$0xff] %v703_v14  ;;  %751 = vst [vmem:[%s1680_s9 + $0xe8] sm:$0xff] %v719_v15 }
 0x1c8   : > { %v601_v20 = vpop.f32.mrf.mxu0  ;;  %v681_v21 = vpop.f32.mrf.mxu1 }
 0x1c9   : > { %v704_v22 = vadd.f32 %v601_v20, %v351_v18  ;;  %v720_v23 = vadd.f32 %v681_v21, %v367_v19 }
 0x1ca   : > { %v603_v24 = vpop.f32.mrf.mxu0  ;;  %v683_v25 = vpop.f32.mrf.mxu1 }
 0x1cb   : > { %736 = vst [vmem:[%s1680_s9 + $0x70] sm:$0xff] %v704_v22  ;;  %752 = vst [vmem:[%s1680_s9 + $0xf0] sm:$0xff] %v720_v23 }
 0x1cc   : > { %v606_v28 = vpop.f32.mrf.mxu0  ;;  %v686_v29 = vpop.f32.mrf.mxu1 }
 0x1cd   : > { %v705_v30 = vadd.f32 %v606_v28, %v352_v26  ;;  %v721_v31 = vadd.f32 %v686_v29, %v368_v27 }
 0x1ce   : > { %v608_v32 = vpop.f32.mrf.mxu0  ;;  %v688_v33 = vpop.f32.mrf.mxu1 }
 0x1cf   : > { %737 = vst [vmem:[%s1680_s9 + $0x78] sm:$0xff] %v705_v30  ;;  %753 = vst [vmem:[%s1680_s9 + $0xf8] sm:$0xff] %v721_v31 }
 0x1d0   : > { %1235 = shalt.err (!%p1232_p8)
}
 0x1d1   : > { %s1236_s3 = scalar_lea.hbm %s1942_s24, 4096  ;;  %s1240_s29 = scalar_lea.hbm %s2065_s30, 12288 }
 0x1d2   : > { %p1237_p12 = scmp.ne.s32.totalorder %s1942_s24, %s1236_s3  ;;  %p1241_p13 = scmp.lt.s32.totalorder %s1942_s24, %s2065_s30 }
 0x1d3   : > { %p1242_p10 = scmp.lt.s32.totalorder %s1240_s29, %s1236_s3 }
 0x1d4   : > { %p1238_p4 = pnand %p1237_p12, %p2066_p3 }
 0x1d5   : > { %p1243_p2 = por %p1242_p10, %p1241_p13 }
 0x1d6   : > { %p1239_p9 = pneg %p1238_p4 }
 0x1d8   : > { %p1244_p0 = pnand %p1243_p2, %p1239_p9 }
 0x1da   : > { %1247 = shalt.err (!%p1244_p0)
}
 0x1db   : > { %s1387_s1 = smov 128   ;;  %s1388_s0 = smov 384  }
 0x1dc   : > { %s1389_s18 = smov 8  }
 0x1dd   : > { %998 = dma.vmem_to_hbm [thread:$0]  (%p2066_p3), %s1944_s6, 4096, %s1942_s24, %s755_s4, %s1387_s1, %s1388_s0, %s1389_s18  }
 0x1de PF: > { %p1015_p11 = scmp.ge.s32.totalorder %s1374_s25, 2  ;;  %s785_s22 = sand.u32 1, %s1322_s12  }
 0x1df   : > { %p2067_p1 = scmp.ne.s32.totalorder %s2058_s23, 0  ;;  %s786_s10 = scalar_lea.sflag [#allocation4], %s785_s22 }
 0x1e1   : > { %p1011_p7 = pnand %p1015_p11, %p2067_p1 }
 0x1e3   : > { %p1012_p6 = pneg %p1011_p7 }
 0x1e5   : > { %1317 = dma.done.wait (%p1012_p6), %s786_s10, 4096  }
 0x1e6   : > { %1319 = vsyncadd (%p1012_p6), %s786_s10, 4294963200  ;;  %s22_s25 = sadd.s32 1, %s1374_s25   ;;  %s2069_s8 = sld [smem:[#allocation18_spill]] }
 0x1e7   : > { %p1976_p5 = scmp.ge.s32.totalorder %s22_s25, 17   ;;  %s2070_s21 = sld [smem:[#allocation15_spill]] }
 0x1e8   : > { %s2071_s22 = sld [smem:[#allocation16_spill]]  ;;  %s2074_s12 = smov %s1326_s13 }
 0x1e9   : > { %s2072_s23 = sld [smem:[#allocation17_spill]]  ;;  %s2075_s13 = smov %s1330_s14 }
 0x1ea   : > { %s2073_s24 = sld [smem:[#allocation19_spill]]  ;;  %s2076_s14 = smov %s1615_s26 }
 0x1eb   : > { %s2077_s15 = smov %s1338_s16  ;;  %s2078_s16 = smov %s1342_s17 }
 0x1ec   : > { %s2079_s17 = smov %s1620_s5  ;;  %s2080_s18 = smov %s1350_s19 }
 0x1ed   : > { %s2081_s19 = smov %s1354_s20  ;;  %s2082_s20 = smov %s2069_s8 }
 0x1ee   :  { %21 = sbr.rel (!%p1976_p5) target bundleno = 16 (0x10), region = 105 }
 0x1f3   :  { %791 = vsyncpa [#allocation3], 1 }
 0x1f4   :  { %793 = vsyncpa [#allocation3 + $0x1], 1 }
 0x1f5   :  { %794 = vsyncpa [#allocation6], 1 }
 0x1f6   :  { %796 = vsyncpa [#allocation6 + $0x1], 1 }
 0x1f7   :  { %797 = vsyncpa [#allocation4], 1 }
 0x1f8   :  { %799 = vsyncpa [#allocation4 + $0x1], 1 }

</bundles_post_ra>
